<compile_context>
chip_gen: v7x
topology: tpu7x:2x2x1
jax: 0.10.0
libtpu: 0.0.40
codegen_flags: <defaults>
</compile_context>

<pallas_src>
import jax
import jax.numpy as jnp
from jax.experimental import pallas as pl
from jax.experimental.pallas import tpu as pltpu


def _round_up(x, m):
    return ((x + m - 1) // m) * m


def ffn_kernel(xT_ref, w1T_ref, b1_ref, w2T_ref, b2_ref, oT_ref):
    # xT_ref: (C, TM) bf16   w1T_ref: (H, C) bf16   b1_ref: (H, 1) f32
    # w2T_ref: (C, H) bf16   b2_ref: (C, 1) f32     oT_ref: (C, TM) f32
    xT = xT_ref[...]
    # MXU matmul #1: (H, C) @ (C, TM) -> (H, TM), f32 accumulation.
    h = jnp.dot(w1T_ref[...], xT, preferred_element_type=jnp.float32)
    # Bias-add + ReLU in f32 on the VPU.
    h = jnp.maximum(h + b1_ref[...], 0.0)
    # MXU matmul #2: (C, H) @ (H, TM), contracting over K = H = 128.
    y = jnp.dot(w2T_ref[...], h.astype(w2T_ref.dtype),
                preferred_element_type=jnp.float32)
    oT_ref[...] = (y + b2_ref[...]).astype(oT_ref.dtype)


def feed_forward(x, w1, b1, w2, b2, *, tm=1024):
    """x: (B, T, C) float32; weights stored (in, out). Returns (B, T, C) f32."""
    B, T, C = x.shape
    H = w1.shape[1]
    M = B * T

    # Row tile: lane-dense (multiple of 128), not larger than the padded M.
    tm = max(128, min(_round_up(tm, 128), _round_up(M, 128)))
    M_pad = _round_up(M, tm)
    grid = (M_pad // tm,)

    # Wrapper-side layout plumbing: pad rows, transpose so rows sit on the lane
    # axis, cast streaming operands + weights to bf16.
    x2d = x.reshape(M, C)
    if M_pad != M:
        x2d = jnp.pad(x2d, ((0, M_pad - M), (0, 0)))
    xT = x2d.T.astype(jnp.bfloat16)              # (C, M_pad)
    w1T = w1.T.astype(jnp.bfloat16)              # (H, C)
    w2T = w2.T.astype(jnp.bfloat16)              # (C, H)
    b1c = b1.reshape(H, 1).astype(jnp.float32)   # (H, 1)
    b2c = b2.reshape(C, 1).astype(jnp.float32)   # (C, 1)

    outT = pl.pallas_call(
        ffn_kernel,
        out_shape=jax.ShapeDtypeStruct((C, M_pad), jnp.float32),
        grid=grid,
        in_specs=[
            # Streaming activation tile (pipelined per grid step).
            # NOTE: if a profile shows exposed DMA at large TM, add
            # pipeline_mode=pl.Buffered(3) here.
            pl.BlockSpec((C, tm), lambda i: (0, i)),
            # Constant-index blocks -> weights/biases stay VMEM-resident.
            pl.BlockSpec((H, C), lambda i: (0, 0)),
            pl.BlockSpec((H, 1), lambda i: (0, 0)),
            pl.BlockSpec((C, H), lambda i: (0, 0)),
            pl.BlockSpec((C, 1), lambda i: (0, 0)),
        ],
        out_specs=pl.BlockSpec((C, tm), lambda i: (0, i)),
        compiler_params=pltpu.CompilerParams(
            dimension_semantics=("parallel",)),
    )(xT, w1T, b1c, w2T, b2c)

    return outT.T[:M].reshape(B, T, C)


def init_params(key, n_embed=32):
    """PyTorch-style Linear init; weights stored (in, out) so kernel does x@W."""
    hidden = 4 * n_embed
    k1, k2, k3, k4 = jax.random.split(key, 4)
    bound1 = 1.0 / (n_embed ** 0.5)
    bound2 = 1.0 / (hidden ** 0.5)
    w1 = jax.random.uniform(k1, (n_embed, hidden), jnp.float32, -bound1, bound1)
    b1 = jax.random.uniform(k2, (hidden,), jnp.float32, -bound1, bound1)
    w2 = jax.random.uniform(k3, (hidden, n_embed), jnp.float32, -bound2, bound2)
    b2 = jax.random.uniform(k4, (n_embed,), jnp.float32, -bound2, bound2)
    return w1, b1, w2, b2


if __name__ == "__main__":
    key = jax.random.PRNGKey(0)
    k_x, k_p = jax.random.split(key)

    n_embed = 32
    B, T = 2, 8
    x = jax.random.normal(k_x, (B, T, n_embed), jnp.float32)
    w1, b1, w2, b2 = init_params(k_p, n_embed)

    out = feed_forward(x, w1, b1, w2, b2)
    out = jax.block_until_ready(out)
    assert out.shape == (B, T, n_embed)

    # Reference with matched bf16 matmul inputs / f32 accumulation.
    x2d = x.reshape(-1, n_embed)
    hb = jnp.dot(x2d.astype(jnp.bfloat16), w1.astype(jnp.bfloat16),
                 preferred_element_type=jnp.float32) + b1
    hb = jnp.maximum(hb, 0.0)
    ref = jnp.dot(hb.astype(jnp.bfloat16), w2.astype(jnp.bfloat16),
                  preferred_element_type=jnp.float32) + b2
    ref = ref.reshape(B, T, n_embed)
    assert jnp.allclose(out, ref, atol=1e-2, rtol=1e-2), \
        float(jnp.max(jnp.abs(out - ref)))

    # Loose sanity check against the full-f32 reference (bf16 rounding slack).
    ref_f32 = (jnp.maximum(x2d @ w1 + b1, 0.0) @ w2 + b2).reshape(B, T, n_embed)
    assert jnp.allclose(out, ref_f32, atol=5e-2, rtol=5e-2)

    print("KERNEL_OK")
</pallas_src>

<mosaic_0001>
module attributes {stable_mosaic.version = 11 : i64} {
  func.func @ffn_kernel(%arg0: i32, %arg1: memref<32x128xbf16, #tpu.memory_space<vmem>>, %arg2: memref<128x32xbf16, #tpu.memory_space<vmem>>, %arg3: memref<128x1xf32, #tpu.memory_space<vmem>>, %arg4: memref<32x128xbf16, #tpu.memory_space<vmem>>, %arg5: memref<32x1xf32, #tpu.memory_space<vmem>>, %arg6: memref<32x128xf32, #tpu.memory_space<vmem>>) attributes {dimension_semantics = [#tpu.dimension_semantics<parallel>], iteration_bounds = array<i64: 1>, scalar_prefetch = 0 : i64, scratch_operands = 0 : i64, tpu.core_type = #tpu.core_type<tc>, window_params = [{transform_indices = @transform_0, window_bounds = array<i64: 32, 128>}, {pipeline_mode = #tpu.pipeline_mode<synchronous>, transform_indices = @transform_1, window_bounds = array<i64: 128, 32>}, {pipeline_mode = #tpu.pipeline_mode<synchronous>, transform_indices = @transform_2, window_bounds = array<i64: 128, 1>}, {pipeline_mode = #tpu.pipeline_mode<synchronous>, transform_indices = @transform_3, window_bounds = array<i64: 32, 128>}, {pipeline_mode = #tpu.pipeline_mode<synchronous>, transform_indices = @transform_4, window_bounds = array<i64: 32, 1>}, {transform_indices = @transform_5, window_bounds = array<i64: 32, 128>}]} {
    %c0 = arith.constant 0 : index
    %c0_0 = arith.constant 0 : index
    %0 = vector.load %arg1[%c0, %c0_0] : memref<32x128xbf16, #tpu.memory_space<vmem>>, vector<32x128xbf16>
    %c0_1 = arith.constant 0 : index
    %c0_2 = arith.constant 0 : index
    %1 = vector.load %arg2[%c0_1, %c0_2] : memref<128x32xbf16, #tpu.memory_space<vmem>>, vector<128x32xbf16>
    %cst = arith.constant dense<0.000000e+00> : vector<128x128xf32>
    %2 = tpu.matmul %1, %0, %cst {dimension_numbers = #tpu.dot_dimension_numbers<[1], [0], [0], [1], [0, 0, 1, 1], [], []>} : vector<128x32xbf16>, vector<32x128xbf16>, vector<128x128xf32> -> vector<128x128xf32>
    %c0_3 = arith.constant 0 : index
    %c0_4 = arith.constant 0 : index
    %3 = vector.load %arg3[%c0_3, %c0_4] : memref<128x1xf32, #tpu.memory_space<vmem>>, vector<128x1xf32>
    %4 = vector.broadcast %3 : vector<128x1xf32> to vector<128x128xf32>
    %5 = arith.addf %2, %4 : vector<128x128xf32>
    %cst_5 = arith.constant 0.000000e+00 : f32
    %6 = vector.broadcast %cst_5 : f32 to vector<128x128xf32>
    %7 = arith.maximumf %5, %6 : vector<128x128xf32>
    %c0_6 = arith.constant 0 : index
    %c0_7 = arith.constant 0 : index
    %8 = vector.load %arg4[%c0_6, %c0_7] : memref<32x128xbf16, #tpu.memory_space<vmem>>, vector<32x128xbf16>
    %9 = arith.truncf %7 : vector<128x128xf32> to vector<128x128xbf16>
    %cst_8 = arith.constant dense<0.000000e+00> : vector<32x128xf32>
    %10 = tpu.matmul %8, %9, %cst_8 {dimension_numbers = #tpu.dot_dimension_numbers<[1], [0], [0], [1], [0, 0, 1, 1], [], []>} : vector<32x128xbf16>, vector<128x128xbf16>, vector<32x128xf32> -> vector<32x128xf32>
    %c0_9 = arith.constant 0 : index
    %c0_10 = arith.constant 0 : index
    %11 = vector.load %arg5[%c0_9, %c0_10] : memref<32x1xf32, #tpu.memory_space<vmem>>, vector<32x1xf32>
    %12 = vector.broadcast %11 : vector<32x1xf32> to vector<32x128xf32>
    %13 = arith.addf %10, %12 : vector<32x128xf32>
    %c0_11 = arith.constant 0 : index
    %c0_12 = arith.constant 0 : index
    %14 = vector.load %arg6[%c0_11, %c0_12] : memref<32x128xf32, #tpu.memory_space<vmem>>, vector<32x128xf32>
    tpu.vector_store %arg6[%c0_11, %c0_12], %13 {strides = array<i32>} : memref<32x128xf32, #tpu.memory_space<vmem>>, vector<32x128xf32>,
    return
  }
  func.func @transform_0(%arg0: i32) -> (i32, i32) {
    %c0_i32 = arith.constant 0 : i32
    %c0_i32_0 = arith.constant 0 : i32
    return %c0_i32, %arg0 : i32, i32
  }
  func.func @transform_1(%arg0: i32) -> (i32, i32) {
    %c0_i32 = arith.constant 0 : i32
    %c0_i32_0 = arith.constant 0 : i32
    %c0_i32_1 = arith.constant 0 : i32
    return %c0_i32, %c0_i32_0 : i32, i32
  }
  func.func @transform_2(%arg0: i32) -> (i32, i32) {
    %c0_i32 = arith.constant 0 : i32
    %c0_i32_0 = arith.constant 0 : i32
    %c0_i32_1 = arith.constant 0 : i32
    return %c0_i32, %c0_i32_0 : i32, i32
  }
  func.func @transform_3(%arg0: i32) -> (i32, i32) {
    %c0_i32 = arith.constant 0 : i32
    %c0_i32_0 = arith.constant 0 : i32
    %c0_i32_1 = arith.constant 0 : i32
    return %c0_i32, %c0_i32_0 : i32, i32
  }
  func.func @transform_4(%arg0: i32) -> (i32, i32) {
    %c0_i32 = arith.constant 0 : i32
    %c0_i32_0 = arith.constant 0 : i32
    %c0_i32_1 = arith.constant 0 : i32
    return %c0_i32, %c0_i32_0 : i32, i32
  }
  func.func @transform_5(%arg0: i32) -> (i32, i32) {
    %c0_i32 = arith.constant 0 : i32
    %c0_i32_0 = arith.constant 0 : i32
    return %c0_i32, %arg0 : i32, i32
  }
}

</mosaic_0001>

<bundles_post_ra>
// kernel: tpu_custom_call.1
= control target key start
LH: loop header
LB: loop body
LE: loop exit
PB: predicated region body
PF: predicated region fallthrough
CT: control target
= control target key end

     0   :  { %vm190_vm0 = vcmask 261120   ;;  %v567_v3 = vmov 0   ;;  %s717_s0 = inlined_call_operand.vmem [shape: bf16[32,128], index: 0, kind: input, shape index: {}]   ;;  %s718_s1 = inlined_call_operand.vmem [shape: bf16[128,32], index: 1, kind: input, shape index: {}]   ;;  %s719_s2 = inlined_call_operand.vmem [shape: f32[128,1], index: 2, kind: input, shape index: {}]   ;;  %s720_s3 = inlined_call_operand.vmem [shape: bf16[32,128], index: 3, kind: input, shape index: {}]   ;;  %s721_s4 = inlined_call_operand.vmem [shape: f32[32,1], index: 4, kind: input, shape index: {}]   ;;  %s722_s5 = inlined_call_operand.hbm [shape: f32[32,128], index: 5, kind: output, shape index: {}]  }
   0x1   :  { %v531_v0 = vld [vmem:[%s717_s0] sm:$0xff]   ;;  %v532_v1 = vld [vmem:[%s717_s0 + $0x8] sm:$0xff]   ;;  %529 = vset.pattern.permute.xlu0 %v567_v3  ;;  %530 = vset.pattern.permute.xlu1 %v567_v3  ;;  %v535_v5 = vld [vmem:[%s718_s1 + $0x10] sm:$0xff]  }
   0x2   :  { %485 = vmatprep.subr.bf16.mxu0 %v531_v0  ;;  %v533_v2 = vld [vmem:[%s718_s1] sm:$0xff]   ;;  %v534_v4 = vld [vmem:[%s718_s1 + $0x8] sm:$0xff]   ;;  %v44_v7 = vld [vmem:[%s719_s2 + $0x10] sm:$0xff] }
   0x3   :  { %486 = vmatpush3.bf16.msra.mxu0 %v531_v0  ;;  %489 = vmatprep.mubr.msk.bf16.mxu0 %vm190_vm0, %v533_v2  ;;  %v42_v6 = vld [vmem:[%s719_s2] sm:$0xff]  ;;  %v43_v8 = vld [vmem:[%s719_s2 + $0x8] sm:$0xff]  ;;  %v45_v9 = vld [vmem:[%s719_s2 + $0x18] sm:$0xff] }
   0x4   :  { %487 = vmatprep.subr.bf16.mxu0 %v532_v1  ;;  %60 = vperm.xlu0 %529, %v42_v6   ;;  %v536_v10 = vld [vmem:[%s718_s1 + $0x18] sm:$0xff]   ;;  %v537_v11 = vld [vmem:[%s718_s1 + $0x20] sm:$0xff]   ;;  %v47_v13 = vld [vmem:[%s719_s2 + $0x28] sm:$0xff] }
   0x5   :  { %70 = vperm.xlu1 %530, %v44_v7   ;;  %v46_v12 = vld [vmem:[%s719_s2 + $0x20] sm:$0xff] }
   0x7   :  { %488 = vmatpush3.bf16.msra.mxu0 %v532_v1 }
   0x8   :  { %65 = vperm.xlu0 %529, %v43_v8  }
   0x9   :  { %75 = vperm.xlu1 %530, %v45_v9  }
   0xa   :  { %490 = vmatmul.mubr.msk.bf16.vlgmr.msra.gmra.mrb[0].mxu0 %vm190_vm0, %v534_v4 }
   0xb   :  { %493 = vmatprep.mubr.msk.bf16.mxu0 %vm190_vm0, %v535_v5 }
  0x12   :  { %494 = vmatmul.mubr.msk.bf16.gmra.mrb[4].mxu0 %vm190_vm0, %v536_v10 }
  0x13   :  { %10 = vsyncpa [#allocation3], 0  ;;  %497 = vmatprep.mubr.msk.bf16.mxu0 %vm190_vm0, %v537_v11  ;;  %80 = vperm.xlu0 %529, %v46_v12   ;;  %v48_v14 = vld [vmem:[%s719_s2 + $0x30] sm:$0xff]  ;;  %v49_v15 = vld [vmem:[%s719_s2 + $0x38] sm:$0xff]  ;;  %s568_s27 = smov [#allocation2]  }
  0x14   :  { %85 = vperm.xlu1 %530, %v47_v13   ;;  %v538_v16 = vld [vmem:[%s718_s1 + $0x28] sm:$0xff]   ;;  %v539_v17 = vld [vmem:[%s718_s1 + $0x30] sm:$0xff]   ;;  %v50_v18 = vld [vmem:[%s719_s2 + $0x40] sm:$0xff]  ;;  %s434_s0 = sshll.u32 %s568_s27, 4  ;;  %s435_s0 = int_to_ptr.vmem [resolvable:$true] %s434_s0 }
  0x15   :  { %v51_v19 = vld [vmem:[%s719_s2 + $0x48] sm:$0xff]  ;;  %v52_v20 = vld [vmem:[%s719_s2 + $0x50] sm:$0xff]  ;;  %v53_v21 = vld [vmem:[%s719_s2 + $0x58] sm:$0xff]  ;;  %p548_p1 = scmp.lt.s32.totalorder %s435_s0, %s435_s0 }
  0x16   :  { %v540_v22 = vld [vmem:[%s718_s1 + $0x38] sm:$0xff]   ;;  %v54_v23 = vld [vmem:[%s719_s2 + $0x60] sm:$0xff]  ;;  %v55_v24 = vld [vmem:[%s719_s2 + $0x68] sm:$0xff] }
  0x17   :  { %90 = vperm.xlu0 %529, %v48_v14   ;;  %v56_v25 = vld [vmem:[%s719_s2 + $0x70] sm:$0xff]  ;;  %v57_v26 = vld [vmem:[%s719_s2 + $0x78] sm:$0xff]  ;;  %v340_v27 = vld [vmem:[%s721_s4] sm:$0xff] }
  0x18   :  { %95 = vperm.xlu1 %530, %v49_v15   ;;  %v341_v28 = vld [vmem:[%s721_s4 + $0x8] sm:$0xff]  ;;  %v342_v29 = vld [vmem:[%s721_s4 + $0x10] sm:$0xff]  ;;  %v343_v30 = vld [vmem:[%s721_s4 + $0x18] sm:$0xff] }
  0x19   :  { %v541_v31 = vld [vmem:[%s720_s3] sm:$0xff]  }
  0x1a   :  { %498 = vmatmul.mubr.msk.bf16.gmra.mrb[8].mxu0 %vm190_vm0, %v538_v16  ;;  %521 = vmatprep.mubr.bf16.mxu1 %v541_v31 }
  0x1b   :  { %501 = vmatprep.mubr.msk.bf16.mxu0 %vm190_vm0, %v539_v17  ;;  %100 = vperm.xlu0 %529, %v50_v18  }
  0x1c   :  { %105 = vperm.xlu1 %530, %v51_v19  }
  0x1f   :  { %110 = vperm.xlu0 %529, %v52_v20  }
  0x20   :  { %115 = vperm.xlu1 %530, %v53_v21  }
  0x22   :  { %502 = vmatmul.mubr.msk.bf16.gmra.mrb[12].mxu0 %vm190_vm0, %v540_v22 }
  0x23   :  { %120 = vperm.xlu0 %529, %v54_v23  }
  0x24   :  { %125 = vperm.xlu1 %530, %v55_v24  }
  0x27   :  { %130 = vperm.xlu0 %529, %v56_v25  }
  0x28   :  { %135 = vperm.xlu1 %530, %v57_v26  }
  0x2b   :  { %346 = vperm.xlu0 %529, %v340_v27  }
  0x2c   :  { %351 = vperm.xlu1 %530, %v341_v28  }
  0x2f   :  { %356 = vperm.xlu0 %529, %v342_v29  }
  0x30   :  { %361 = vperm.xlu1 %530, %v343_v30  }
  0x83   :  { %v61_v32 = vpop.permute.xlu0 %60 }
  0x84   :  { %v71_v33 = vpop.permute.xlu1 %70 }
  0x87   :  { %v66_v34 = vpop.permute.xlu0 %65 }
  0x88   :  { %v76_v35 = vpop.permute.xlu1 %75 }
  0x92   :  { %v81_v36 = vpop.permute.xlu0 %80 }
  0x93   :  { %v86_v37 = vpop.permute.xlu1 %85 }
  0x96   :  { %v91_v38 = vpop.permute.xlu0 %90 }
  0x97   :  { %v96_v42 = vpop.permute.xlu1 %95 }
  0x9a   :  { %v101_v50 = vpop.permute.xlu0 %100 }
  0x9b   :  { %v106_v54 = vpop.permute.xlu1 %105 }
  0x9e   :  { %v111_v63 = vpop.permute.xlu0 %110 }
  0x9f   :  { %v116_v3 = vpop.permute.xlu1 %115 }
  0xa2   :  { %v121_v11 = vpop.permute.xlu0 %120 }
  0xa3   :  { %v126_v16 = vpop.permute.xlu1 %125 }
  0xa6   :  { %v131_v23 = vpop.permute.xlu0 %130 }
  0xa7   :  { %v136_v28 = vpop.permute.xlu1 %135 }
  0xdd   :  { %v491_v39 = vpop.f32.mrb[0].mxu0 }
  0xde   :  { %v258_v40 = vadd.f32 %v491_v39, %v71_v33  ;;  %v249_v41 = vpop.f32.mrb[1].mxu0 }
  0xdf   :  { %v250_v43 = vadd.f32 %v249_v41, %v61_v32  ;;  %v492_v44 = vpop.f32.mrb[2].mxu0  ;;  %v347_v41 = vpop.permute.xlu0 %346 }
  0xe0   :  { %v261_v45 = vadd.f32 %v492_v44, %v76_v35  ;;  %v252_v46 = vpop.f32.mrb[3].mxu0  ;;  %v314_v48 = vmax.f32 %v258_v40, 0.0  ;;  %v542_v40 = vld [vmem:[%s720_s3 + $0x8] sm:$0xff]   ;;  %s543_s3 = scalar_lea.vmem %s435_s0, 512 }
  0xe1   :  { %v253_v47 = vadd.f32 %v252_v46, %v66_v34  ;;  %v312_v51 = vmax.f32 %v250_v43, 0.0  ;;  %p544_p0 = scmp.ne.s32.totalorder %s435_s0, %s543_s3  ;;  %p549_p2 = scmp.lt.s32.totalorder %s543_s3, %s543_s3 }
  0xe2   :  { %v315_v49 = vmax.f32 %v261_v45, 0.0 }
  0xe3   :  { %v313_v52 = vmax.f32 %v253_v47, 0.0  ;;  %v357_v43 = vpop.permute.xlu0 %356  ;;  %p550_p3 = por %p549_p2, %p548_p1 }
  0xe4   :  { %v333_v53 = vpack.c.bf16 %v315_v49, %v314_v48 }
  0xe5   :  { %v495_v55 = vpop.f32.mrb[4].mxu0  ;;  %v332_v56 = vpack.c.bf16 %v313_v52, %v312_v51  ;;  %p551_p4 = pnand %p550_p3, %p544_p0 }
  0xe6   :  { %v274_v57 = vadd.f32 %v495_v55, %v91_v38  ;;  %v265_v58 = vpop.f32.mrb[5].mxu0 }
  0xe7   :  { %v266_v59 = vadd.f32 %v265_v58, %v81_v36  ;;  %v496_v60 = vpop.f32.mrb[6].mxu0  ;;  %505 = vmatprep.subr.bf16.mxu1 %v332_v56 }
  0xe8   :  { %v277_v61 = vadd.f32 %v496_v60, %v96_v42  ;;  %v268_v62 = vpop.f32.mrb[7].mxu0  ;;  %506 = vmatpush3.bf16.msra.mxu1 %v332_v56  ;;  %v318_v1 = vmax.f32 %v274_v57, 0.0  ;;  %v352_v42 = vpop.permute.xlu1 %351 }
  0xe9   :  { %v269_v0 = vadd.f32 %v268_v62, %v86_v37  ;;  %507 = vmatprep.subr.bf16.mxu1 %v333_v53  ;;  %v316_v4 = vmax.f32 %v266_v59, 0.0 }
  0xea   :  { %v319_v2 = vmax.f32 %v277_v61, 0.0 }
  0xeb   :  { %v317_v5 = vmax.f32 %v269_v0, 0.0 }
  0xec   :  { %v335_v6 = vpack.c.bf16 %v319_v2, %v318_v1  ;;  %508 = vmatpush3.bf16.msra.mxu1 %v333_v53  ;;  %v362_v47 = vpop.permute.xlu1 %361 }
  0xed   :  { %v334_v7 = vpack.c.bf16 %v317_v5, %v316_v4  ;;  %v499_v8 = vpop.f32.mrb[8].mxu0 }
  0xee   :  { %v290_v9 = vadd.f32 %v499_v8, %v111_v63  ;;  %v281_v10 = vpop.f32.mrb[9].mxu0 }
  0xef   :  { %v282_v12 = vadd.f32 %v281_v10, %v101_v50  ;;  %v500_v13 = vpop.f32.mrb[10].mxu0  ;;  %509 = vmatprep.subr.bf16.mxu1 %v334_v7 }
  0xf0   :  { %v293_v14 = vadd.f32 %v500_v13, %v116_v3  ;;  %v284_v15 = vpop.f32.mrb[11].mxu0  ;;  %510 = vmatpush3.bf16.msra.mxu1 %v334_v7  ;;  %v322_v18 = vmax.f32 %v290_v9, 0.0 }
  0xf1   :  { %v285_v17 = vadd.f32 %v284_v15, %v106_v54  ;;  %511 = vmatprep.subr.bf16.mxu1 %v335_v6  ;;  %v320_v20 = vmax.f32 %v282_v12, 0.0 }
  0xf2   :  { %v323_v19 = vmax.f32 %v293_v14, 0.0 }
  0xf3   :  { %v321_v21 = vmax.f32 %v285_v17, 0.0 }
  0xf4   :  { %v337_v22 = vpack.c.bf16 %v323_v19, %v322_v18  ;;  %512 = vmatpush3.bf16.msra.mxu1 %v335_v6 }
  0xf5   :  { %v336_v24 = vpack.c.bf16 %v321_v21, %v320_v20  ;;  %v503_v25 = vpop.f32.mrb[12].mxu0 }
  0xf6   :  { %v306_v26 = vadd.f32 %v503_v25, %v131_v23  ;;  %v297_v27 = vpop.f32.mrb[13].mxu0 }
  0xf7   :  { %v298_v29 = vadd.f32 %v297_v27, %v121_v11  ;;  %v504_v30 = vpop.f32.mrb[14].mxu0  ;;  %513 = vmatprep.subr.bf16.mxu1 %v336_v24 }
  0xf8   :  { %v309_v31 = vadd.f32 %v504_v30, %v136_v28  ;;  %v300_v32 = vpop.f32.mrb[15].mxu0  ;;  %514 = vmatpush3.bf16.msra.mxu1 %v336_v24  ;;  %v326_v34 = vmax.f32 %v306_v26, 0.0 }
  0xf9   :  { %v301_v33 = vadd.f32 %v300_v32, %v126_v16  ;;  %515 = vmatprep.subr.bf16.mxu1 %v337_v22  ;;  %v324_v36 = vmax.f32 %v298_v29, 0.0 }
  0xfa   :  { %v327_v35 = vmax.f32 %v309_v31, 0.0 }
  0xfb   :  { %v325_v37 = vmax.f32 %v301_v33, 0.0 }
  0xfc   :  { %v339_v38 = vpack.c.bf16 %v327_v35, %v326_v34  ;;  %516 = vmatpush3.bf16.msra.mxu1 %v337_v22 }
  0xfd   :  { %v338_v39 = vpack.c.bf16 %v325_v37, %v324_v36 }
  0xff   :  { %517 = vmatprep.subr.bf16.mxu1 %v338_v39 }
 0x100   :  { %518 = vmatpush3.bf16.msra.mxu1 %v338_v39 }
 0x101   :  { %519 = vmatprep.subr.bf16.mxu1 %v339_v38 }
 0x104   :  { %520 = vmatpush3.bf16.msra.mxu1 %v339_v38 }
 0x107   :  { %522 = vmatmul.mubr.bf16.vlgmr.msra.gmra.mrb[0].mxu1 %v542_v40 }
 0x1da   :  { %v523_v44 = vpop.f32.mrb[0].mxu1 }
 0x1db   :  { %v419_v45 = vadd.f32 %v523_v44, %v357_v43  ;;  %v410_v46 = vpop.f32.mrb[1].mxu1 }
 0x1dc   :  { %v411_v48 = vadd.f32 %v410_v46, %v347_v41  ;;  %v524_v49 = vpop.f32.mrb[2].mxu1 }
 0x1dd   :  { %427 = vst [vmem:[#allocation2 + $0x10] sm:$0xff] %v419_v45  ;;  %v422_v50 = vadd.f32 %v524_v49, %v362_v47  ;;  %v413_v51 = vpop.f32.mrb[3].mxu1 }
 0x1de   :  { %425 = vst [vmem:[#allocation2] sm:$0xff] %v411_v48  ;;  %v414_v52 = vadd.f32 %v413_v51, %v352_v42 }
 0x1df   :  { %428 = vst [vmem:[#allocation2 + $0x18] sm:$0xff] %v422_v50 }
 0x1e0   :  { %426 = vst [vmem:[#allocation2 + $0x8] sm:$0xff] %v414_v52 }
 0x1e1   :  { %554 = shalt.err (!%p551_p4)
}
 0x1e2   :  { %s555_s30 = scalar_lea.hbm %s722_s5, 512 }
 0x1e3   :  { %p556_p5 = scmp.ne.s32.totalorder %s722_s5, %s555_s30  ;;  %p559_p6 = scmp.lt.u32.totalorder %s555_s30, %s722_s5 }
 0x1e5   :  { %p561_p7 = pnand %p559_p6, %p556_p5 }
 0x1e7   :  { %564 = shalt.err (!%p561_p7)
}
 0x1e8   :  { %s569_s10 = smov 128   ;;  %s570_s11 = smov 8  }
 0x1e9   :  { %440 = dma.vmem_to_hbm [thread:$0]  %s435_s0, 512, %s722_s5, [#allocation3], %s569_s10, %s569_s10, %s570_s11  }
 0x1ea   :  { %565 = dma.done.wait [#allocation3], 512  }
 0x1eb   :  { %566 = vsyncadd [#allocation3], 4294966784 }
 0x1ec   :  { %444 = vsyncpa [#allocation3], 1 }

</bundles_post_ra>
